<compile_context>
chip_gen: v6e
topology: v6e:2x2x1
jax: 0.10.0
libtpu: 0.0.40
codegen_flags: <defaults>
</compile_context>

<pallas_src>
import functools
import math

import jax
import jax.numpy as jnp
from jax import lax
from jax.experimental import pallas as pl
from jax.experimental.pallas import tpu as pltpu


_NEG_INF = -1e30  # large finite negative: avoids inf-inf NaNs in the rescale


def _vmem_limit_bytes():
    """Per-generation VMEM budget: physical capacity minus ~16 MiB headroom."""
    cap = 64 * 1024 * 1024
    try:
        info = pltpu.get_tpu_info()
        cap = int(getattr(info, "vmem_capacity_bytes", cap) or cap)
    except Exception:
        pass
    return int(min(100 * 1024 * 1024, max(32 * 1024 * 1024, cap - 16 * 1024 * 1024)))


def _pick_tile(n, preferred):
    """Largest tile <= preferred that divides n and is sublane-friendly."""
    for t in (preferred, 1024, 512, 256, 128, 64, 32, 16, 8):
        if t <= n and n % t == 0:
            return t
    return n  # full dimension is always a legal block size


# ----------------------------------------------------------------------------
# Kernel 1: fused QKV projection over flattened (b*T, d_in) rows.
#   x_ref: (tm, d_in) bf16; w_ref: (d_in, 3*d_out) bf16 (Q columns pre-scaled).
# ----------------------------------------------------------------------------
def _qkv_proj_kernel(x_ref, w_ref, qkv_ref):
    acc = jnp.dot(x_ref[...], w_ref[...], preferred_element_type=jnp.float32)
    qkv_ref[...] = acc.astype(qkv_ref.dtype)


def _qkv_projection(x_flat, w_fused_t, tm):
    M, d_in = x_flat.shape
    n_out = w_fused_t.shape[1]
    return pl.pallas_call(
        _qkv_proj_kernel,
        out_shape=jax.ShapeDtypeStruct((M, n_out), x_flat.dtype),
        grid_spec=pltpu.PrefetchScalarGridSpec(
            num_scalar_prefetch=0,
            grid=(M // tm,),
            in_specs=[
                pl.BlockSpec((tm, d_in), lambda i: (i, 0)),
                # Loop-invariant fused weight: whole array VMEM-resident.
                pl.BlockSpec(memory_space=pltpu.MemorySpace.VMEM),
            ],
            out_specs=pl.BlockSpec((tm, n_out), lambda i: (i, 0)),
        ),
        compiler_params=pltpu.CompilerParams(
            dimension_semantics=("parallel",),
            vmem_limit_bytes=_vmem_limit_bytes(),
        ),
    )(x_flat, w_fused_t)


# ----------------------------------------------------------------------------
# Kernel 2: flash-style causal attention with online softmax.
# Grid: (batch, q_tile, kv_tile), kv axis last / 'arbitrary'; m/l/acc in VMEM.
# ----------------------------------------------------------------------------
def _flash_attn_kernel(q_ref, k_ref, v_ref, o_ref, m_ref, l_ref, acc_ref, *, tq, tk):
    qi = pl.program_id(1)
    ki = pl.program_id(2)

    @pl.when(ki == 0)
    def _init():
        m_ref[...] = jnp.full_like(m_ref, _NEG_INF)
        l_ref[...] = jnp.zeros_like(l_ref)
        acc_ref[...] = jnp.zeros_like(acc_ref)

    q_start = qi * tq
    k_start = ki * tk
    q_end = q_start + (tq - 1)

    # Skip kv tiles strictly above the causal diagonal (their K/V DMA is also
    # elided by the clamped index_map below).
    @pl.when(k_start <= q_end)
    def _process():
        q = q_ref[0]                                   # (tq, d) bf16, pre-scaled
        k = k_ref[0]                                   # (tk, d) bf16
        dn = (((1,), (1,)), ((), ()))                  # q @ k.T without transpose
        s = lax.dot_general(q, k, dn, preferred_element_type=jnp.float32)
        # Causal mask: a no-op on fully-below-diagonal blocks, so one compiled
        # body covers both diagonal and full blocks.
        row = lax.broadcasted_iota(jnp.int32, (tq, tk), 0) + q_start
        col = lax.broadcasted_iota(jnp.int32, (tq, tk), 1) + k_start
        s = jnp.where(col > row, _NEG_INF, s)
        m_prev = m_ref[...]                            # (tq, 1) f32
        m_new = jnp.maximum(m_prev, jnp.max(s, axis=-1, keepdims=True))
        alpha = jnp.exp(m_prev - m_new)
        p = jnp.exp(s - m_new)                         # (tq, tk) f32
        l_ref[...] = alpha * l_ref[...] + jnp.sum(p, axis=-1, keepdims=True)
        acc_ref[...] = alpha * acc_ref[...] + jnp.dot(
            p.astype(v_ref.dtype), v_ref[0], preferred_element_type=jnp.float32)
        m_ref[...] = m_new

    @pl.when(ki == pl.num_programs(2) - 1)
    def _finalize():
        # TODO(synk): training-mode nn.Dropout on the attention weights
        # (random mask + 1/(1-p) scaling) is omitted; eval-mode dropout is
        # the identity.
        o_ref[0] = (acc_ref[...] * pl.reciprocal(l_ref[...], approx=True)
                    ).astype(o_ref.dtype)


def _flash_attention(q, k, v, out_dtype, tq, tk):
    b, T, d = q.shape
    kernel = functools.partial(_flash_attn_kernel, tq=tq, tk=tk)

    def kv_index(bi, qi, ki):
        # Clamp above-diagonal (fully masked) steps to the last useful kv
        # block: the block index matches the previous step's, so Pallas
        # reuses the resident tile and elides the DMA.
        return (bi, jnp.minimum(ki, ((qi + 1) * tq - 1) // tk), 0)

    return pl.pallas_call(
        kernel,
        out_shape=jax.ShapeDtypeStruct((b, T, d), out_dtype),
        grid_spec=pltpu.PrefetchScalarGridSpec(
            num_scalar_prefetch=0,
            grid=(b, T // tq, T // tk),
            in_specs=[
                pl.BlockSpec((1, tq, d), lambda bi, qi, ki: (bi, qi, 0)),
                pl.BlockSpec((1, tk, d), kv_index),
                pl.BlockSpec((1, tk, d), kv_index),
            ],
            out_specs=pl.BlockSpec((1, tq, d), lambda bi, qi, ki: (bi, qi, 0)),
            scratch_shapes=[
                pltpu.VMEM((tq, 1), jnp.float32),   # running max m
                pltpu.VMEM((tq, 1), jnp.float32),   # running denom l
                pltpu.VMEM((tq, d), jnp.float32),   # output accumulator
            ],
        ),
        compiler_params=pltpu.CompilerParams(
            dimension_semantics=("parallel", "parallel", "arbitrary"),
            vmem_limit_bytes=_vmem_limit_bytes(),
        ),
    )(q, k, v)


# ----------------------------------------------------------------------------
# Public wrapper: matches CausalAttention.forward (eval mode, qkv_bias=False).
# ----------------------------------------------------------------------------
def causal_attention(x, w_query, w_key, w_value, *,
                     q_tile=256, kv_tile=512, proj_row_tile=512):
    """x: (b, T, d_in); weights: (d_out, d_in) each. Returns (b, T, d_out)."""
    b, T, d_in = x.shape
    d_out = w_query.shape[0]
    scale = 1.0 / math.sqrt(float(d_out))

    tm = _pick_tile(b * T, proj_row_tile)
    tq = _pick_tile(T, q_tile)
    tk = _pick_tile(T, kv_tile)

    # bf16 matmul inputs (MXU-native on v5e/v6e/v7x); scale folded into the
    # Q weight once (in f32, before the cast); weights fused + pre-transposed
    # so each row tile does a single (tm, d_in) @ (d_in, 3*d_out) matmul with
    # a lane-dense 3*d_out-wide store.
    w_fused_t = jnp.concatenate(
        [w_query * scale, w_key, w_value], axis=0).T.astype(jnp.bfloat16)
    x_flat = x.reshape(b * T, d_in).astype(jnp.bfloat16)

    qkv = _qkv_projection(x_flat, w_fused_t, tm)           # (b*T, 3*d_out) bf16
    q = qkv[:, :d_out].reshape(b, T, d_out)
    k = qkv[:, d_out:2 * d_out].reshape(b, T, d_out)
    v = qkv[:, 2 * d_out:].reshape(b, T, d_out)
    return _flash_attention(q, k, v, x.dtype, tq, tk)


def causal_attention_ref(x, w_query, w_key, w_value):
    """Pure-JAX f32 reference mirroring the PyTorch forward (eval mode)."""
    q = x @ w_query.T
    k = x @ w_key.T
    v = x @ w_value.T
    scores = jnp.einsum("btd,bsd->bts", q, k)
    T = x.shape[1]
    mask = jnp.triu(jnp.ones((T, T), dtype=bool), k=1)
    scores = jnp.where(mask[None], -jnp.inf, scores)
    weights = jax.nn.softmax(scores / math.sqrt(k.shape[-1]), axis=-1)
    return jnp.einsum("bts,bsd->btd", weights, v)


if __name__ == "__main__":
    # Module hyperparameters (lane/MXU-aligned, still small & fast).
    batch = 2
    num_tokens = 256        # <= context_length
    d_in = 128
    d_out = 128
    context_length = 256
    dropout = 0.0           # eval-mode dropout (identity)

    key = jax.random.PRNGKey(0)
    kx, kq, kk, kv = jax.random.split(key, 4)

    x = jax.random.normal(kx, (batch, num_tokens, d_in), dtype=jnp.float32)

    # Deterministic "PyTorch-like" Linear init: U(-1/sqrt(d_in), 1/sqrt(d_in))
    bound = 1.0 / math.sqrt(d_in)
    w_query = jax.random.uniform(kq, (d_out, d_in), jnp.float32, -bound, bound)
    w_key = jax.random.uniform(kk, (d_out, d_in), jnp.float32, -bound, bound)
    w_value = jax.random.uniform(kv, (d_out, d_in), jnp.float32, -bound, bound)

    out = causal_attention(x, w_query, w_key, w_value)
    out = jax.block_until_ready(out)

    ref = causal_attention_ref(x, w_query, w_key, w_value)
    assert out.shape == (batch, num_tokens, d_out)
    # Tolerance accounts for bf16 matmul inputs (f32 accumulation throughout).
    assert jnp.allclose(out, ref, atol=2e-2, rtol=2e-2), (
        f"max abs err = {jnp.max(jnp.abs(out - ref))}"
    )

    print("KERNEL_OK")
</pallas_src>

<mosaic_0001>
module attributes {stable_mosaic.version = 11 : i64} {
  func.func @_qkv_proj_kernel(%arg0: i32, %arg1: memref<512x128xbf16, #tpu.memory_space<vmem>>, %arg2: memref<128x384xbf16, #tpu.memory_space<vmem>>, %arg3: memref<512x384xbf16, #tpu.memory_space<vmem>>) attributes {dimension_semantics = [#tpu.dimension_semantics<parallel>], iteration_bounds = array<i64: 1>, scalar_prefetch = 0 : i64, scratch_operands = 0 : i64, tpu.core_type = #tpu.core_type<tc>, window_params = [{transform_indices = @transform_0, window_bounds = array<i64: 512, 128>}, {pipeline_mode = #tpu.pipeline_mode<synchronous>, transform_indices = @transform_1, window_bounds = array<i64: 128, 384>}, {transform_indices = @transform_2, window_bounds = array<i64: 512, 384>}]} {
    %c0 = arith.constant 0 : index
    %c0_0 = arith.constant 0 : index
    %0 = vector.load %arg1[%c0, %c0_0] : memref<512x128xbf16, #tpu.memory_space<vmem>>, vector<512x128xbf16>
    %c0_1 = arith.constant 0 : index
    %c0_2 = arith.constant 0 : index
    %1 = vector.load %arg2[%c0_1, %c0_2] : memref<128x384xbf16, #tpu.memory_space<vmem>>, vector<128x384xbf16>
    %cst = arith.constant dense<0.000000e+00> : vector<512x384xf32>
    %2 = tpu.matmul %0, %1, %cst {dimension_numbers = #tpu.dot_dimension_numbers<[1], [0], [0], [1], [0, 0, 1, 1], [], []>} : vector<512x128xbf16>, vector<128x384xbf16>, vector<512x384xf32> -> vector<512x384xf32>
    %3 = arith.truncf %2 : vector<512x384xf32> to vector<512x384xbf16>
    %c0_3 = arith.constant 0 : index
    %c0_4 = arith.constant 0 : index
    %4 = vector.load %arg3[%c0_3, %c0_4] : memref<512x384xbf16, #tpu.memory_space<vmem>>, vector<512x384xbf16>
    tpu.vector_store %arg3[%c0_3, %c0_4], %3 {strides = array<i32>} : memref<512x384xbf16, #tpu.memory_space<vmem>>, vector<512x384xbf16>,
    return
  }
  func.func @transform_0(%arg0: i32) -> (i32, i32) {
    %c0_i32 = arith.constant 0 : i32
    %c0_i32_0 = arith.constant 0 : i32
    return %arg0, %c0_i32 : i32, i32
  }
  func.func @transform_1(%arg0: i32) -> (i32, i32) {
    %c0_i32 = arith.constant 0 : i32
    %c0_i32_0 = arith.constant 0 : i32
    %c0_i32_1 = arith.constant 0 : i32
    return %c0_i32, %c0_i32_0 : i32, i32
  }
  func.func @transform_2(%arg0: i32) -> (i32, i32) {
    %c0_i32 = arith.constant 0 : i32
    %c0_i32_0 = arith.constant 0 : i32
    return %arg0, %c0_i32 : i32, i32
  }
}

</mosaic_0001>

<bundles_post_ra>
// kernel: tpu_custom_call.1
= control target key start
LH: loop header
LB: loop body
LE: loop exit
PB: predicated region body
PF: predicated region fallthrough
CT: control target
= control target key end

     0   :  { %7 = vsyncpa [#allocation3], 0  ;;  %s2577_s0 = inlined_call_operand.hbm [shape: bf16[512,128], index: 0, kind: input, shape index: {}]   ;;  %s2578_s1 = inlined_call_operand.hbm [shape: bf16[128,384], index: 1, kind: input, shape index: {}]   ;;  %s2579_s2 = inlined_call_operand.hbm [shape: bf16[512,384], index: 2, kind: output, shape index: {}]  }
   0x1   :  { %8 = vsyncpa [#allocation6], 0 }
   0x2   :  { %9 = vsyncpa [#allocation4], 0  ;;  %s2471_s9 = smov [#allocation2]  }
   0x3   :  { %s15_s10 = sshll.u32 %s2471_s9, 4  ;;  %s16_s10 = int_to_ptr.vmem [resolvable:$true] %s15_s10 }
   0x4   :  { %s2413_s11 = scalar_lea.vmem %s16_s10, 4096  ;;  %p2418_p1 = scmp.lt.s32.totalorder %s16_s10, %s16_s10 }
   0x5   :  { %p2414_p0 = scmp.ne.s32.totalorder %s16_s10, %s2413_s11  ;;  %p2419_p2 = scmp.lt.s32.totalorder %s2413_s11, %s2413_s11 }
   0x7   :  { %p2420_p3 = por %p2419_p2, %p2418_p1 }
   0x9   :  { %p2421_p4 = pnand %p2420_p3, %p2414_p0 }
   0xb   :  { %2424 = shalt.err (!%p2421_p4)
}
   0xc   :  { %s2472_s12 = smov 64   ;;  %s2473_s13 = smov 4  }
   0xd   :  { %21 = dma.hbm_to_vmem [thread:$0]  %s2577_s0, 4096, %s16_s10, [#allocation3], %s2472_s12, %s2472_s12, %s2473_s13  }
   0xe   :  { %s2474_s16 = smov [#allocation5]  }
   0xf   :  { %s27_s17 = sshll.u32 %s2474_s16, 4  ;;  %s28_s17 = int_to_ptr.vmem [resolvable:$true] %s27_s17 }
  0x10   :  { %s2433_s18 = scalar_lea.vmem %s28_s17, 3072  ;;  %p2438_p6 = scmp.lt.s32.totalorder %s28_s17, %s28_s17 }
  0x11   :  { %p2434_p5 = scmp.ne.s32.totalorder %s28_s17, %s2433_s18  ;;  %p2439_p7 = scmp.lt.s32.totalorder %s2433_s18, %s2433_s18 }
  0x13   :  { %p2440_p8 = por %p2439_p7, %p2438_p6 }
  0x15   :  { %p2441_p9 = pnand %p2440_p8, %p2434_p5 }
  0x17   :  { %2444 = shalt.err (!%p2441_p9)
}
  0x18   :  { %s2475_s19 = smov 192   ;;  %s2476_s20 = smov 12  }
  0x19   :  { %33 = dma.hbm_to_vmem [thread:$0]  %s2578_s1, 3072, %s28_s17, [#allocation6], %s2475_s19, %s2475_s19, %s2476_s20  }
  0x1a   :  { %2465 = dma.done.wait [#allocation3], 4096  }
  0x1b   :  { %2466 = vsyncadd [#allocation3], 4294963200 }
  0x1c   :  { %2467 = dma.done.wait [#allocation6], 3072  }
  0x1d   :  { %2468 = vsyncadd [#allocation6], 4294964224  ;;  %v2477_v0 = vmov 0   ;;  %v2341_v1 = vld [vmem:[#allocation5 + $0xac] ss:$12 sps:$4 sm:$0xff]   ;;  %v2505_v18 = vld [vmem:[#allocation2] sm:$0xff]  }
  0x1e   :  { %489 = vmatprep.mubr.bf16.mxu0 %v2477_v0  ;;  %729 = vmatprep.mubr.bf16.mxu1 %v2477_v0  ;;  %v2343_v2 = vld [vmem:[#allocation5 + $0xa8] ss:$12 sps:$4 sm:$0xff]   ;;  %v2346_v4 = vld [vmem:[#allocation5 + $0x90] ss:$12 sps:$4 sm:$0xff]   ;;  %v2349_v6 = vld [vmem:[#allocation5 + $0x78] ss:$12 sps:$4 sm:$0xff]  }
  0x1f   :  { %457 = vmatprep.subr.bf16.mxu0 %v2341_v1  ;;  %2317 = vmatprep.subr.bf16.mxu1 %v2341_v1  ;;  %v2344_v3 = vld [vmem:[#allocation5 + $0x94] ss:$12 sps:$4 sm:$0xff]   ;;  %v2347_v5 = vld [vmem:[#allocation5 + $0x7c] ss:$12 sps:$4 sm:$0xff]   ;;  %v2350_v7 = vld [vmem:[#allocation5 + $0x64] ss:$12 sps:$4 sm:$0xff]  }
  0x20   :  { %458 = vmatpush1.bf16.msra.mxu0 %v2343_v2  ;;  %2325 = vmatpush1.bf16.msra.mxu1 %v2343_v2  ;;  %v2352_v8 = vld [vmem:[#allocation5 + $0x60] ss:$12 sps:$4 sm:$0xff]   ;;  %v2355_v10 = vld [vmem:[#allocation5 + $0x48] ss:$12 sps:$4 sm:$0xff]   ;;  %v2358_v12 = vld [vmem:[#allocation5 + $0x30] ss:$12 sps:$4 sm:$0xff]  }
  0x21   :  { %459 = vmatprep.subr.bf16.mxu0 %v2344_v3  ;;  %2318 = vmatprep.subr.bf16.mxu1 %v2344_v3  ;;  %v2353_v9 = vld [vmem:[#allocation5 + $0x4c] ss:$12 sps:$4 sm:$0xff]   ;;  %v2356_v11 = vld [vmem:[#allocation5 + $0x34] ss:$12 sps:$4 sm:$0xff]   ;;  %v2359_v13 = vld [vmem:[#allocation5 + $0x1c] ss:$12 sps:$4 sm:$0xff]  }
  0x22   :  { %v2361_v14 = vld [vmem:[#allocation5 + $0x18] ss:$12 sps:$4 sm:$0xff]   ;;  %v2364_v16 = vld [vmem:[#allocation5] ss:$12 sps:$4 sm:$0xff]   ;;  %v2367_v17 = vld [vmem:[#allocation5 + $0xb0] ss:$12 sps:$4 sm:$0xff]  }
  0x23   :  { %v2362_v15 = vld [vmem:[#allocation5 + $0x4] ss:$12 sps:$4 sm:$0xff]   ;;  %v2373_v21 = vld [vmem:[#allocation5 + $0x80] ss:$12 sps:$4 sm:$0xff]   ;;  %v2376_v24 = vld [vmem:[#allocation5 + $0x68] ss:$12 sps:$4 sm:$0xff]  }
  0x24   :  { %460 = vmatpush1.bf16.msra.mxu0 %v2346_v4  ;;  %2326 = vmatpush1.bf16.msra.mxu1 %v2346_v4  ;;  %v2507_v19 = vld [vmem:[#allocation2 + $0xc0] sm:$0xff]   ;;  %v2368_v22 = vld [vmem:[#allocation2 + $0x8] sm:$0xff]   ;;  %v2371_v25 = vld [vmem:[#allocation2 + $0x10] sm:$0xff]   ;;  %s2478_s0 = smov [#allocation7]  }
  0x25   :  { %461 = vmatprep.subr.bf16.mxu0 %v2347_v5  ;;  %2319 = vmatprep.subr.bf16.mxu1 %v2347_v5  ;;  %v2370_v20 = vld [vmem:[#allocation5 + $0x98] ss:$12 sps:$4 sm:$0xff]   ;;  %v2513_v23 = vld [vmem:[#allocation2 + $0xc8] sm:$0xff]   ;;  %v2379_v26 = vld [vmem:[#allocation5 + $0x50] ss:$12 sps:$4 sm:$0xff]   ;;  %s1872_s1 = sshll.u32 %s2478_s0, 4  ;;  %s1873_s1 = int_to_ptr.vmem [resolvable:$true] %s1872_s1 }
  0x26   :  { %v2518_v27 = vld [vmem:[#allocation2 + $0xd0] sm:$0xff]   ;;  %v2382_v28 = vld [vmem:[#allocation5 + $0x38] ss:$12 sps:$4 sm:$0xff]   ;;  %v2385_v29 = vld [vmem:[#allocation5 + $0x20] ss:$12 sps:$4 sm:$0xff]   ;;  %s2445_s23 = scalar_lea.vmem %s1873_s1, 12288  ;;  %p2450_p11 = scmp.lt.s32.totalorder %s1873_s1, %s1873_s1 }
  0x27   :  { %v2374_v30 = vld [vmem:[#allocation2 + $0x18] sm:$0xff]   ;;  %v2388_v32 = vld [vmem:[#allocation5 + $0x8] ss:$12 sps:$4 sm:$0xff]   ;;  %v2377_v33 = vld [vmem:[#allocation2 + $0x20] sm:$0xff]   ;;  %p2446_p10 = scmp.ne.s32.totalorder %s1873_s1, %s2445_s23  ;;  %p2451_p12 = scmp.lt.s32.totalorder %s2445_s23, %s2445_s23 }
  0x28   :  { %462 = vmatpush1.bf16.msra.mxu0 %v2349_v6  ;;  %2327 = vmatpush1.bf16.msra.mxu1 %v2349_v6  ;;  %v2523_v31 = vld [vmem:[#allocation2 + $0xd8] sm:$0xff]   ;;  %v2528_v34 = vld [vmem:[#allocation2 + $0xe0] sm:$0xff]   ;;  %v2380_v35 = vld [vmem:[#allocation2 + $0x28] sm:$0xff]  }
  0x29   :  { %463 = vmatprep.subr.bf16.mxu0 %v2350_v7  ;;  %2320 = vmatprep.subr.bf16.mxu1 %v2350_v7  ;;  %v2533_v36 = vld [vmem:[#allocation2 + $0xe8] sm:$0xff]   ;;  %v2383_v37 = vld [vmem:[#allocation2 + $0x30] sm:$0xff]   ;;  %v2386_v39 = vld [vmem:[#allocation2 + $0x38] sm:$0xff]   ;;  %p2452_p13 = por %p2451_p12, %p2450_p11 }
  0x2a   :  { %v2538_v38 = vld [vmem:[#allocation2 + $0xf0] sm:$0xff]   ;;  %v2543_v40 = vld [vmem:[#allocation2 + $0xf8] sm:$0xff]   ;;  %v2389_v41 = vld [vmem:[#allocation2 + $0x40] sm:$0xff]  }
  0x2b   :  { %v2390_v42 = vld [vmem:[#allocation2 + $0x48] sm:$0xff]   ;;  %v2391_v43 = vld [vmem:[#allocation2 + $0x50] sm:$0xff]   ;;  %v2392_v44 = vld [vmem:[#allocation2 + $0x58] sm:$0xff]   ;;  %p2453_p0 = pnand %p2452_p13, %p2446_p10 }
  0x2c   :  { %464 = vmatpush1.bf16.msra.mxu0 %v2352_v8  ;;  %2328 = vmatpush1.bf16.msra.mxu1 %v2352_v8  ;;  %v2393_v45 = vld [vmem:[#allocation2 + $0x60] sm:$0xff]   ;;  %v2394_v46 = vld [vmem:[#allocation2 + $0x68] sm:$0xff]   ;;  %v2395_v47 = vld [vmem:[#allocation2 + $0x70] sm:$0xff]  }
  0x2d   :  { %465 = vmatprep.subr.bf16.mxu0 %v2353_v9  ;;  %2321 = vmatprep.subr.bf16.mxu1 %v2353_v9  ;;  %v2396_v48 = vld [vmem:[#allocation2 + $0x78] sm:$0xff]   ;;  %v2397_v49 = vld [vmem:[#allocation2 + $0x80] sm:$0xff]   ;;  %v2398_v50 = vld [vmem:[#allocation2 + $0x88] sm:$0xff]  }
  0x2e   :  { %v2399_v51 = vld [vmem:[#allocation2 + $0x90] sm:$0xff]   ;;  %v2400_v52 = vld [vmem:[#allocation2 + $0x98] sm:$0xff]   ;;  %v2401_v53 = vld [vmem:[#allocation2 + $0xa0] sm:$0xff]  }
  0x2f   :  { %v2402_v54 = vld [vmem:[#allocation2 + $0xa8] sm:$0xff]   ;;  %v2403_v55 = vld [vmem:[#allocation2 + $0xb0] sm:$0xff]   ;;  %v2404_v56 = vld [vmem:[#allocation2 + $0xb8] sm:$0xff]  }
  0x30   :  { %466 = vmatpush1.bf16.msra.mxu0 %v2355_v10  ;;  %2329 = vmatpush1.bf16.msra.mxu1 %v2355_v10 }
  0x31   :  { %467 = vmatprep.subr.bf16.mxu0 %v2356_v11  ;;  %2322 = vmatprep.subr.bf16.mxu1 %v2356_v11 }
  0x34   :  { %468 = vmatpush1.bf16.msra.mxu0 %v2358_v12  ;;  %2330 = vmatpush1.bf16.msra.mxu1 %v2358_v12 }
  0x35   :  { %469 = vmatprep.subr.bf16.mxu0 %v2359_v13  ;;  %2323 = vmatprep.subr.bf16.mxu1 %v2359_v13 }
  0x38   :  { %470 = vmatpush1.bf16.msra.mxu0 %v2361_v14  ;;  %2331 = vmatpush1.bf16.msra.mxu1 %v2361_v14 }
  0x39   :  { %471 = vmatprep.subr.bf16.mxu0 %v2362_v15  ;;  %2324 = vmatprep.subr.bf16.mxu1 %v2362_v15 }
  0x3c   :  { %472 = vmatpush1.bf16.msra.mxu0 %v2364_v16  ;;  %2332 = vmatpush1.bf16.msra.mxu1 %v2364_v16 }
  0x3d   :  { %2237 = vmatprep.subr.bf16.mxu1 %v2367_v17 }
  0x3f   :  { %490 = vmatmul.mubr.bf16.vlgmr.msra.gmra.mxu0 %v2505_v18  ;;  %730 = vmatmul.mubr.bf16.vlgmr.msra.gmra.mxu1 %v2507_v19 }
  0x40   :  { %2238 = vmatpush3.bf16.msra.mxu1 %v2367_v17  ;;  %499 = vmatprep.mubr.bf16.mxu0 %v2477_v0 }
  0x41   :  { %739 = vmatprep.mubr.bf16.mxu1 %v2477_v0  ;;  %2239 = vmatprep.subr.bf16.mxu1 %v2370_v20 }
  0x44   :  { %2240 = vmatpush3.bf16.msra.mxu1 %v2370_v20 }
  0x45   :  { %2241 = vmatprep.subr.bf16.mxu1 %v2373_v21 }
  0x47   :  { %500 = vmatmul.mubr.bf16.gmra.mxu0 %v2368_v22  ;;  %740 = vmatmul.mubr.bf16.gmra.mxu1 %v2513_v23 }
  0x48   :  { %509 = vmatprep.mubr.bf16.mxu0 %v2477_v0  ;;  %749 = vmatprep.mubr.bf16.mxu1 %v2477_v0 }
  0x49   :  { %2242 = vmatpush3.bf16.msra.mxu1 %v2373_v21 }
  0x4a   :  { %2243 = vmatprep.subr.bf16.mxu1 %v2376_v24 }
  0x4d   :  { %2244 = vmatpush3.bf16.msra.mxu1 %v2376_v24 }
  0x4e   :  { %2245 = vmatprep.subr.bf16.mxu1 %v2379_v26 }
  0x4f   :  { %510 = vmatmul.mubr.bf16.gmra.mxu0 %v2371_v25  ;;  %750 = vmatmul.mubr.bf16.gmra.mxu1 %v2518_v27 }
  0x50   :  { %519 = vmatprep.mubr.bf16.mxu0 %v2477_v0  ;;  %759 = vmatprep.mubr.bf16.mxu1 %v2477_v0 }
  0x51   :  { %2246 = vmatpush3.bf16.msra.mxu1 %v2379_v26 }
  0x52   :  { %2247 = vmatprep.subr.bf16.mxu1 %v2382_v28 }
  0x55   :  { %2248 = vmatpush3.bf16.msra.mxu1 %v2382_v28 }
  0x56   :  { %2249 = vmatprep.subr.bf16.mxu1 %v2385_v29 }
  0x57   :  { %520 = vmatmul.mubr.bf16.gmra.mxu0 %v2374_v30  ;;  %760 = vmatmul.mubr.bf16.gmra.mxu1 %v2523_v31 }
  0x58   :  { %529 = vmatprep.mubr.bf16.mxu0 %v2477_v0  ;;  %769 = vmatprep.mubr.bf16.mxu1 %v2477_v0 }
  0x59   :  { %2250 = vmatpush3.bf16.msra.mxu1 %v2385_v29 }
  0x5a   :  { %2251 = vmatprep.subr.bf16.mxu1 %v2388_v32 }
  0x5d   :  { %2252 = vmatpush3.bf16.msra.mxu1 %v2388_v32 }
  0x5f   :  { %530 = vmatmul.mubr.bf16.gmra.mxu0 %v2377_v33  ;;  %770 = vmatmul.mubr.bf16.gmra.mxu1 %v2528_v34 }
  0x60   :  { %539 = vmatprep.mubr.bf16.mxu0 %v2477_v0  ;;  %779 = vmatprep.mubr.bf16.mxu1 %v2477_v0 }
  0x67   :  { %540 = vmatmul.mubr.bf16.gmra.mxu0 %v2380_v35  ;;  %780 = vmatmul.mubr.bf16.gmra.mxu1 %v2533_v36 }
  0x68   :  { %549 = vmatprep.mubr.bf16.mxu0 %v2477_v0  ;;  %789 = vmatprep.mubr.bf16.mxu1 %v2477_v0 }
  0x6f   :  { %550 = vmatmul.mubr.bf16.gmra.mxu0 %v2383_v37  ;;  %790 = vmatmul.mubr.bf16.gmra.mxu1 %v2538_v38 }
  0x70   :  { %559 = vmatprep.mubr.bf16.mxu0 %v2477_v0  ;;  %799 = vmatprep.mubr.bf16.mxu1 %v2477_v0 }
  0x77   :  { %560 = vmatmul.mubr.bf16.gmra.mxu0 %v2386_v39  ;;  %800 = vmatmul.mubr.bf16.gmra.mxu1 %v2543_v40 }
  0x78   :  { %569 = vmatprep.mubr.bf16.mxu0 %v2477_v0  ;;  %2253 = vmatprep.mubr.bf16.mxu1 %v2505_v18 }
  0x7f   :  { %570 = vmatmul.mubr.bf16.gmra.mxu0 %v2389_v41  ;;  %2254 = vmatmul.mubr.bf16.vlgmr.msra.gmra.mxu1 %v2368_v22 }
  0x80   :  { %579 = vmatprep.mubr.bf16.mxu0 %v2477_v0  ;;  %2257 = vmatprep.mubr.bf16.mxu1 %v2371_v25 }
  0x87   :  { %580 = vmatmul.mubr.bf16.gmra.mxu0 %v2390_v42  ;;  %2258 = vmatmul.mubr.bf16.gmra.mxu1 %v2374_v30 }
  0x88   :  { %589 = vmatprep.mubr.bf16.mxu0 %v2477_v0  ;;  %2261 = vmatprep.mubr.bf16.mxu1 %v2377_v33 }
  0x8f   :  { %590 = vmatmul.mubr.bf16.gmra.mxu0 %v2391_v43  ;;  %2262 = vmatmul.mubr.bf16.gmra.mxu1 %v2380_v35 }
  0x90   :  { %599 = vmatprep.mubr.bf16.mxu0 %v2477_v0  ;;  %2265 = vmatprep.mubr.bf16.mxu1 %v2383_v37 }
  0x97   :  { %600 = vmatmul.mubr.bf16.gmra.mxu0 %v2392_v44  ;;  %2266 = vmatmul.mubr.bf16.gmra.mxu1 %v2386_v39 }
  0x98   :  { %609 = vmatprep.mubr.bf16.mxu0 %v2477_v0  ;;  %2269 = vmatprep.mubr.bf16.mxu1 %v2389_v41 }
  0x9f   :  { %610 = vmatmul.mubr.bf16.gmra.mxu0 %v2393_v45  ;;  %2270 = vmatmul.mubr.bf16.gmra.mxu1 %v2390_v42 }
  0xa0   :  { %619 = vmatprep.mubr.bf16.mxu0 %v2477_v0  ;;  %2273 = vmatprep.mubr.bf16.mxu1 %v2391_v43 }
  0xa7   :  { %620 = vmatmul.mubr.bf16.gmra.mxu0 %v2394_v46  ;;  %2274 = vmatmul.mubr.bf16.gmra.mxu1 %v2392_v44 }
  0xa8   :  { %629 = vmatprep.mubr.bf16.mxu0 %v2477_v0  ;;  %2277 = vmatprep.mubr.bf16.mxu1 %v2393_v45 }
  0xaf   :  { %630 = vmatmul.mubr.bf16.gmra.mxu0 %v2395_v47  ;;  %2278 = vmatmul.mubr.bf16.gmra.mxu1 %v2394_v46 }
  0xb0   :  { %639 = vmatprep.mubr.bf16.mxu0 %v2477_v0  ;;  %2281 = vmatprep.mubr.bf16.mxu1 %v2395_v47 }
  0xb7   :  { %640 = vmatmul.mubr.bf16.gmra.mxu0 %v2396_v48  ;;  %2282 = vmatmul.mubr.bf16.gmra.mxu1 %v2396_v48 }
  0xb8   :  { %649 = vmatprep.mubr.bf16.mxu0 %v2477_v0  ;;  %2285 = vmatprep.mubr.bf16.mxu1 %v2397_v49 }
  0xbf   :  { %650 = vmatmul.mubr.bf16.gmra.mxu0 %v2397_v49  ;;  %2286 = vmatmul.mubr.bf16.gmra.mxu1 %v2398_v50 }
  0xc0   :  { %659 = vmatprep.mubr.bf16.mxu0 %v2477_v0  ;;  %2289 = vmatprep.mubr.bf16.mxu1 %v2399_v51 }
  0xc7   :  { %660 = vmatmul.mubr.bf16.gmra.mxu0 %v2398_v50  ;;  %2290 = vmatmul.mubr.bf16.gmra.mxu1 %v2400_v52 }
  0xc8   :  { %669 = vmatprep.mubr.bf16.mxu0 %v2477_v0  ;;  %2293 = vmatprep.mubr.bf16.mxu1 %v2401_v53 }
  0xcf   :  { %670 = vmatmul.mubr.bf16.gmra.mxu0 %v2399_v51  ;;  %2294 = vmatmul.mubr.bf16.gmra.mxu1 %v2402_v54 }
  0xd0   :  { %679 = vmatprep.mubr.bf16.mxu0 %v2477_v0  ;;  %2297 = vmatprep.mubr.bf16.mxu1 %v2403_v55 }
  0xd7   :  { %680 = vmatmul.mubr.bf16.gmra.mxu0 %v2400_v52  ;;  %2298 = vmatmul.mubr.bf16.gmra.mxu1 %v2404_v56 }
  0xd8   :  { %689 = vmatprep.mubr.bf16.mxu0 %v2477_v0  ;;  %2301 = vmatprep.mubr.bf16.mxu1 %v2507_v19 }
  0xdf   :  { %690 = vmatmul.mubr.bf16.gmra.mxu0 %v2401_v53  ;;  %2302 = vmatmul.mubr.bf16.gmra.mxu1 %v2513_v23 }
  0xe0   :  { %699 = vmatprep.mubr.bf16.mxu0 %v2477_v0  ;;  %2305 = vmatprep.mubr.bf16.mxu1 %v2518_v27 }
  0xe7   :  { %700 = vmatmul.mubr.bf16.gmra.mxu0 %v2402_v54  ;;  %2306 = vmatmul.mubr.bf16.gmra.mxu1 %v2523_v31 }
  0xe8   :  { %709 = vmatprep.mubr.bf16.mxu0 %v2477_v0  ;;  %2309 = vmatprep.mubr.bf16.mxu1 %v2528_v34 }
  0xef   :  { %710 = vmatmul.mubr.bf16.gmra.mxu0 %v2403_v55  ;;  %2310 = vmatmul.mubr.bf16.gmra.mxu1 %v2533_v36 }
  0xf0   :  { %719 = vmatprep.mubr.bf16.mxu0 %v2477_v0  ;;  %2313 = vmatprep.mubr.bf16.mxu1 %v2538_v38 }
  0xf7   :  { %720 = vmatmul.mubr.bf16.gmra.mxu0 %v2404_v56  ;;  %2314 = vmatmul.mubr.bf16.gmra.mxu1 %v2543_v40 }
  0xff   :  { %v491_v57 = vpop.f32.mrf.mxu0  ;;  %v731_v58 = vpop.f32.mrf.mxu1 }
 0x101   :  { %v493_v59 = vpop.f32.mrf.mxu0  ;;  %v733_v60 = vpop.f32.mrf.mxu1 }
 0x102   :  { %v2069_v61 = vpack.c.bf16 %v493_v59, %v491_v57  ;;  %v2165_v62 = vpack.c.bf16 %v733_v60, %v731_v58 }
 0x103   :  { %v495_v63 = vpop.f32.mrf.mxu0  ;;  %v735_v1 = vpop.f32.mrf.mxu1 }
 0x104   :  { %1739 = vst [vmem:[#allocation7] sm:$0xff] %v2069_v61  ;;  %1835 = vst [vmem:[#allocation7 + $0x240] sm:$0xff] %v2165_v62 }
 0x105   :  { %v497_v2 = vpop.f32.mrf.mxu0  ;;  %v737_v3 = vpop.f32.mrf.mxu1 }
 0x106   :  { %v2071_v4 = vpack.c.bf16 %v497_v2, %v495_v63  ;;  %v2167_v5 = vpack.c.bf16 %v737_v3, %v735_v1 }
 0x107   :  { %v501_v0 = vpop.f32.mrf.mxu0  ;;  %v741_v6 = vpop.f32.mrf.mxu1 }
 0x108   :  { %1741 = vst [vmem:[#allocation7 + $0xc] sm:$0xff] %v2071_v4  ;;  %1837 = vst [vmem:[#allocation7 + $0x24c] sm:$0xff] %v2167_v5 }
 0x109   :  { %v503_v7 = vpop.f32.mrf.mxu0  ;;  %v743_v8 = vpop.f32.mrf.mxu1 }
 0x10a   :  { %v2073_v9 = vpack.c.bf16 %v503_v7, %v501_v0  ;;  %v2169_v10 = vpack.c.bf16 %v743_v8, %v741_v6 }
 0x10b   :  { %v505_v11 = vpop.f32.mrf.mxu0  ;;  %v745_v12 = vpop.f32.mrf.mxu1 }
 0x10c   :  { %1743 = vst [vmem:[#allocation7 + $0x18] sm:$0xff] %v2073_v9  ;;  %1839 = vst [vmem:[#allocation7 + $0x258] sm:$0xff] %v2169_v10 }
 0x10d   :  { %v507_v13 = vpop.f32.mrf.mxu0  ;;  %v747_v14 = vpop.f32.mrf.mxu1 }
 0x10e   :  { %v2075_v15 = vpack.c.bf16 %v507_v13, %v505_v11  ;;  %v2171_v16 = vpack.c.bf16 %v747_v14, %v745_v12 }
 0x10f   :  { %v511_v17 = vpop.f32.mrf.mxu0  ;;  %v751_v18 = vpop.f32.mrf.mxu1 }
 0x110   :  { %1745 = vst [vmem:[#allocation7 + $0x24] sm:$0xff] %v2075_v15  ;;  %1841 = vst [vmem:[#allocation7 + $0x264] sm:$0xff] %v2171_v16 }
 0x111   :  { %v513_v19 = vpop.f32.mrf.mxu0  ;;  %v753_v20 = vpop.f32.mrf.mxu1 }
 0x112   :  { %v2077_v21 = vpack.c.bf16 %v513_v19, %v511_v17  ;;  %v2173_v22 = vpack.c.bf16 %v753_v20, %v751_v18 }
 0x113   :  { %v515_v23 = vpop.f32.mrf.mxu0  ;;  %v755_v24 = vpop.f32.mrf.mxu1 }
 0x114   :  { %1747 = vst [vmem:[#allocation7 + $0x30] sm:$0xff] %v2077_v21  ;;  %1843 = vst [vmem:[#allocation7 + $0x270] sm:$0xff] %v2173_v22 }
 0x115   :  { %v517_v25 = vpop.f32.mrf.mxu0  ;;  %v757_v26 = vpop.f32.mrf.mxu1 }
 0x116   :  { %v2079_v27 = vpack.c.bf16 %v517_v25, %v515_v23  ;;  %v2175_v28 = vpack.c.bf16 %v757_v26, %v755_v24 }
 0x117   :  { %v521_v29 = vpop.f32.mrf.mxu0  ;;  %v761_v30 = vpop.f32.mrf.mxu1 }
 0x118   :  { %1749 = vst [vmem:[#allocation7 + $0x3c] sm:$0xff] %v2079_v27  ;;  %1845 = vst [vmem:[#allocation7 + $0x27c] sm:$0xff] %v2175_v28 }
 0x119   :  { %v523_v31 = vpop.f32.mrf.mxu0  ;;  %v763_v32 = vpop.f32.mrf.mxu1 }
 0x11a   :  { %v2081_v33 = vpack.c.bf16 %v523_v31, %v521_v29  ;;  %v2177_v34 = vpack.c.bf16 %v763_v32, %v761_v30 }
 0x11b   :  { %v525_v35 = vpop.f32.mrf.mxu0  ;;  %v765_v36 = vpop.f32.mrf.mxu1 }
 0x11c   :  { %1751 = vst [vmem:[#allocation7 + $0x48] sm:$0xff] %v2081_v33  ;;  %1847 = vst [vmem:[#allocation7 + $0x288] sm:$0xff] %v2177_v34 }
 0x11d   :  { %v527_v37 = vpop.f32.mrf.mxu0  ;;  %v767_v38 = vpop.f32.mrf.mxu1 }
 0x11e   :  { %v2083_v39 = vpack.c.bf16 %v527_v37, %v525_v35  ;;  %v2179_v40 = vpack.c.bf16 %v767_v38, %v765_v36 }
 0x11f   :  { %v531_v41 = vpop.f32.mrf.mxu0  ;;  %v771_v42 = vpop.f32.mrf.mxu1 }
 0x120   :  { %1753 = vst [vmem:[#allocation7 + $0x54] sm:$0xff] %v2083_v39  ;;  %1849 = vst [vmem:[#allocation7 + $0x294] sm:$0xff] %v2179_v40 }
 0x121   :  { %v533_v43 = vpop.f32.mrf.mxu0  ;;  %v773_v44 = vpop.f32.mrf.mxu1 }
 0x122   :  { %v2085_v45 = vpack.c.bf16 %v533_v43, %v531_v41  ;;  %v2181_v46 = vpack.c.bf16 %v773_v44, %v771_v42 }
 0x123   :  { %v535_v47 = vpop.f32.mrf.mxu0  ;;  %v775_v48 = vpop.f32.mrf.mxu1 }
 0x124   :  { %1755 = vst [vmem:[#allocation7 + $0x60] sm:$0xff] %v2085_v45  ;;  %1851 = vst [vmem:[#allocation7 + $0x2a0] sm:$0xff] %v2181_v46 }
 0x125   :  { %v537_v49 = vpop.f32.mrf.mxu0  ;;  %v777_v50 = vpop.f32.mrf.mxu1 }
 0x126   :  { %v2087_v51 = vpack.c.bf16 %v537_v49, %v535_v47  ;;  %v2183_v52 = vpack.c.bf16 %v777_v50, %v775_v48 }
 0x127   :  { %v541_v53 = vpop.f32.mrf.mxu0  ;;  %v781_v54 = vpop.f32.mrf.mxu1 }
 0x128   :  { %1757 = vst [vmem:[#allocation7 + $0x6c] sm:$0xff] %v2087_v51  ;;  %1853 = vst [vmem:[#allocation7 + $0x2ac] sm:$0xff] %v2183_v52 }
 0x129   :  { %v543_v55 = vpop.f32.mrf.mxu0  ;;  %v783_v56 = vpop.f32.mrf.mxu1 }
 0x12a   :  { %v2089_v57 = vpack.c.bf16 %v543_v55, %v541_v53  ;;  %v2185_v58 = vpack.c.bf16 %v783_v56, %v781_v54 }
 0x12b   :  { %v545_v59 = vpop.f32.mrf.mxu0  ;;  %v785_v60 = vpop.f32.mrf.mxu1 }
 0x12c   :  { %1759 = vst [vmem:[#allocation7 + $0x78] sm:$0xff] %v2089_v57  ;;  %1855 = vst [vmem:[#allocation7 + $0x2b8] sm:$0xff] %v2185_v58 }
 0x12d   :  { %v547_v61 = vpop.f32.mrf.mxu0  ;;  %v787_v62 = vpop.f32.mrf.mxu1 }
 0x12e   :  { %v2091_v63 = vpack.c.bf16 %v547_v61, %v545_v59  ;;  %v2187_v1 = vpack.c.bf16 %v787_v62, %v785_v60 }
 0x12f   :  { %v551_v2 = vpop.f32.mrf.mxu0  ;;  %v791_v3 = vpop.f32.mrf.mxu1 }
 0x130   :  { %1761 = vst [vmem:[#allocation7 + $0x84] sm:$0xff] %v2091_v63  ;;  %1857 = vst [vmem:[#allocation7 + $0x2c4] sm:$0xff] %v2187_v1 }
 0x131   :  { %v553_v4 = vpop.f32.mrf.mxu0  ;;  %v793_v5 = vpop.f32.mrf.mxu1 }
 0x132   :  { %v2093_v0 = vpack.c.bf16 %v553_v4, %v551_v2  ;;  %v2189_v6 = vpack.c.bf16 %v793_v5, %v791_v3 }
 0x133   :  { %v555_v7 = vpop.f32.mrf.mxu0  ;;  %v795_v8 = vpop.f32.mrf.mxu1 }
 0x134   :  { %1763 = vst [vmem:[#allocation7 + $0x90] sm:$0xff] %v2093_v0  ;;  %1859 = vst [vmem:[#allocation7 + $0x2d0] sm:$0xff] %v2189_v6 }
 0x135   :  { %v557_v9 = vpop.f32.mrf.mxu0  ;;  %v797_v10 = vpop.f32.mrf.mxu1 }
 0x136   :  { %v2095_v11 = vpack.c.bf16 %v557_v9, %v555_v7  ;;  %v2191_v12 = vpack.c.bf16 %v797_v10, %v795_v8 }
 0x137   :  { %v561_v13 = vpop.f32.mrf.mxu0  ;;  %v801_v14 = vpop.f32.mrf.mxu1 }
 0x138   :  { %1765 = vst [vmem:[#allocation7 + $0x9c] sm:$0xff] %v2095_v11  ;;  %1861 = vst [vmem:[#allocation7 + $0x2dc] sm:$0xff] %v2191_v12 }
 0x139   :  { %v563_v15 = vpop.f32.mrf.mxu0  ;;  %v803_v16 = vpop.f32.mrf.mxu1 }
 0x13a   :  { %v2097_v17 = vpack.c.bf16 %v563_v15, %v561_v13  ;;  %v2193_v18 = vpack.c.bf16 %v803_v16, %v801_v14 }
 0x13b   :  { %v565_v19 = vpop.f32.mrf.mxu0  ;;  %v805_v20 = vpop.f32.mrf.mxu1 }
 0x13c   :  { %1767 = vst [vmem:[#allocation7 + $0xa8] sm:$0xff] %v2097_v17  ;;  %1863 = vst [vmem:[#allocation7 + $0x2e8] sm:$0xff] %v2193_v18 }
 0x13d   :  { %v567_v21 = vpop.f32.mrf.mxu0  ;;  %v807_v22 = vpop.f32.mrf.mxu1 }
 0x13e   :  { %v2099_v23 = vpack.c.bf16 %v567_v21, %v565_v19  ;;  %v2195_v24 = vpack.c.bf16 %v807_v22, %v805_v20 }
 0x13f   :  { %v571_v25 = vpop.f32.mrf.mxu0  ;;  %v2255_v26 = vpop.f32.mrf.mxu1 }
 0x140   :  { %1769 = vst [vmem:[#allocation7 + $0xb4] sm:$0xff] %v2099_v23  ;;  %1865 = vst [vmem:[#allocation7 + $0x2f4] sm:$0xff] %v2195_v24  ;;  %v2074_v27 = vpack.c.bf16 %v2255_v26, %v2255_v26 }
 0x141   :  { %v573_v28 = vpop.f32.mrf.mxu0  ;;  %v844_v29 = vpop.f32.mrf.mxu1 }
 0x142   :  { %1744 = vst [vmem:[#allocation7 + $0x20] sm:$0xf] %v2074_v27  ;;  %v2101_v30 = vpack.c.bf16 %v573_v28, %v571_v25  ;;  %v2070_v31 = vpack.c.bf16 %v844_v29, %v844_v29 }
 0x143   :  { %v575_v32 = vpop.f32.mrf.mxu0  ;;  %v2256_v33 = vpop.f32.mrf.mxu1 }
 0x144   :  { %1771 = vst [vmem:[#allocation7 + $0xc0] sm:$0xff] %v2101_v30  ;;  %1740 = vst [vmem:[#allocation7 + $0x8] sm:$0xf] %v2070_v31  ;;  %v2076_v34 = vpack.c.bf16 %v2256_v33, %v2256_v33 }
 0x145   :  { %v577_v35 = vpop.f32.mrf.mxu0  ;;  %v847_v36 = vpop.f32.mrf.mxu1 }
 0x146   :  { %1746 = vst [vmem:[#allocation7 + $0x2c] sm:$0xf] %v2076_v34  ;;  %v2103_v37 = vpack.c.bf16 %v577_v35, %v575_v32  ;;  %v2072_v38 = vpack.c.bf16 %v847_v36, %v847_v36 }
 0x147   :  { %v581_v39 = vpop.f32.mrf.mxu0  ;;  %v2259_v40 = vpop.f32.mrf.mxu1 }
 0x148   :  { %1773 = vst [vmem:[#allocation7 + $0xcc] sm:$0xff] %v2103_v37  ;;  %1742 = vst [vmem:[#allocation7 + $0x14] sm:$0xf] %v2072_v38  ;;  %v2082_v41 = vpack.c.bf16 %v2259_v40, %v2259_v40 }
 0x149   :  { %v583_v42 = vpop.f32.mrf.mxu0  ;;  %v860_v43 = vpop.f32.mrf.mxu1 }
 0x14a   :  { %1752 = vst [vmem:[#allocation7 + $0x50] sm:$0xf] %v2082_v41  ;;  %v2105_v44 = vpack.c.bf16 %v583_v42, %v581_v39  ;;  %v2078_v45 = vpack.c.bf16 %v860_v43, %v860_v43 }
 0x14b   :  { %v585_v46 = vpop.f32.mrf.mxu0  ;;  %v2260_v47 = vpop.f32.mrf.mxu1 }
 0x14c   :  { %1775 = vst [vmem:[#allocation7 + $0xd8] sm:$0xff] %v2105_v44  ;;  %1748 = vst [vmem:[#allocation7 + $0x38] sm:$0xf] %v2078_v45  ;;  %v2084_v48 = vpack.c.bf16 %v2260_v47, %v2260_v47 }
 0x14d   :  { %v587_v49 = vpop.f32.mrf.mxu0  ;;  %v863_v50 = vpop.f32.mrf.mxu1 }
 0x14e   :  { %1754 = vst [vmem:[#allocation7 + $0x5c] sm:$0xf] %v2084_v48  ;;  %v2107_v51 = vpack.c.bf16 %v587_v49, %v585_v46  ;;  %v2080_v52 = vpack.c.bf16 %v863_v50, %v863_v50 }
 0x14f   :  { %v591_v53 = vpop.f32.mrf.mxu0  ;;  %v2263_v54 = vpop.f32.mrf.mxu1 }
 0x150   :  { %1777 = vst [vmem:[#allocation7 + $0xe4] sm:$0xff] %v2107_v51  ;;  %1750 = vst [vmem:[#allocation7 + $0x44] sm:$0xf] %v2080_v52  ;;  %v2090_v55 = vpack.c.bf16 %v2263_v54, %v2263_v54 }
 0x151   :  { %v593_v56 = vpop.f32.mrf.mxu0  ;;  %v876_v57 = vpop.f32.mrf.mxu1 }
 0x152   :  { %1760 = vst [vmem:[#allocation7 + $0x80] sm:$0xf] %v2090_v55  ;;  %v2109_v58 = vpack.c.bf16 %v593_v56, %v591_v53  ;;  %v2086_v59 = vpack.c.bf16 %v876_v57, %v876_v57 }
 0x153   :  { %v595_v60 = vpop.f32.mrf.mxu0  ;;  %v2264_v61 = vpop.f32.mrf.mxu1 }
 0x154   :  { %1779 = vst [vmem:[#allocation7 + $0xf0] sm:$0xff] %v2109_v58  ;;  %1756 = vst [vmem:[#allocation7 + $0x68] sm:$0xf] %v2086_v59  ;;  %v2092_v62 = vpack.c.bf16 %v2264_v61, %v2264_v61 }
 0x155   :  { %v597_v63 = vpop.f32.mrf.mxu0  ;;  %v879_v1 = vpop.f32.mrf.mxu1 }
 0x156   :  { %1762 = vst [vmem:[#allocation7 + $0x8c] sm:$0xf] %v2092_v62  ;;  %v2111_v2 = vpack.c.bf16 %v597_v63, %v595_v60  ;;  %v2088_v3 = vpack.c.bf16 %v879_v1, %v879_v1 }
 0x157   :  { %v601_v4 = vpop.f32.mrf.mxu0  ;;  %v2267_v5 = vpop.f32.mrf.mxu1 }
 0x158   :  { %1781 = vst [vmem:[#allocation7 + $0xfc] sm:$0xff] %v2111_v2  ;;  %1758 = vst [vmem:[#allocation7 + $0x74] sm:$0xf] %v2088_v3  ;;  %v2098_v0 = vpack.c.bf16 %v2267_v5, %v2267_v5 }
 0x159   :  { %v603_v6 = vpop.f32.mrf.mxu0  ;;  %v892_v7 = vpop.f32.mrf.mxu1 }
 0x15a   :  { %1768 = vst [vmem:[#allocation7 + $0xb0] sm:$0xf] %v2098_v0  ;;  %v2113_v8 = vpack.c.bf16 %v603_v6, %v601_v4  ;;  %v2094_v9 = vpack.c.bf16 %v892_v7, %v892_v7 }
 0x15b   :  { %v605_v10 = vpop.f32.mrf.mxu0  ;;  %v2268_v11 = vpop.f32.mrf.mxu1 }
 0x15c   :  { %1783 = vst [vmem:[#allocation7 + $0x108] sm:$0xff] %v2113_v8  ;;  %1764 = vst [vmem:[#allocation7 + $0x98] sm:$0xf] %v2094_v9  ;;  %v2100_v12 = vpack.c.bf16 %v2268_v11, %v2268_v11 }
 0x15d   :  { %v607_v13 = vpop.f32.mrf.mxu0  ;;  %v895_v14 = vpop.f32.mrf.mxu1 }
 0x15e   :  { %1770 = vst [vmem:[#allocation7 + $0xbc] sm:$0xf] %v2100_v12  ;;  %v2115_v15 = vpack.c.bf16 %v607_v13, %v605_v10  ;;  %v2096_v16 = vpack.c.bf16 %v895_v14, %v895_v14 }
 0x15f   :  { %v611_v17 = vpop.f32.mrf.mxu0  ;;  %v2271_v18 = vpop.f32.mrf.mxu1 }
 0x160   :  { %1785 = vst [vmem:[#allocation7 + $0x114] sm:$0xff] %v2115_v15  ;;  %1766 = vst [vmem:[#allocation7 + $0xa4] sm:$0xf] %v2096_v16  ;;  %v2106_v19 = vpack.c.bf16 %v2271_v18, %v2271_v18 }
 0x161   :  { %v613_v20 = vpop.f32.mrf.mxu0  ;;  %v908_v21 = vpop.f32.mrf.mxu1 }
 0x162   :  { %1776 = vst [vmem:[#allocation7 + $0xe0] sm:$0xf] %v2106_v19  ;;  %v2117_v22 = vpack.c.bf16 %v613_v20, %v611_v17  ;;  %v2102_v23 = vpack.c.bf16 %v908_v21, %v908_v21 }
 0x163   :  { %v615_v24 = vpop.f32.mrf.mxu0  ;;  %v2272_v25 = vpop.f32.mrf.mxu1 }
 0x164   :  { %1787 = vst [vmem:[#allocation7 + $0x120] sm:$0xff] %v2117_v22  ;;  %1772 = vst [vmem:[#allocation7 + $0xc8] sm:$0xf] %v2102_v23  ;;  %v2108_v26 = vpack.c.bf16 %v2272_v25, %v2272_v25 }
 0x165   :  { %v617_v27 = vpop.f32.mrf.mxu0  ;;  %v911_v28 = vpop.f32.mrf.mxu1 }
 0x166   :  { %1778 = vst [vmem:[#allocation7 + $0xec] sm:$0xf] %v2108_v26  ;;  %v2119_v29 = vpack.c.bf16 %v617_v27, %v615_v24  ;;  %v2104_v30 = vpack.c.bf16 %v911_v28, %v911_v28 }
 0x167   :  { %v621_v31 = vpop.f32.mrf.mxu0  ;;  %v2275_v32 = vpop.f32.mrf.mxu1 }
 0x168   :  { %1789 = vst [vmem:[#allocation7 + $0x12c] sm:$0xff] %v2119_v29  ;;  %1774 = vst [vmem:[#allocation7 + $0xd4] sm:$0xf] %v2104_v30  ;;  %v2114_v33 = vpack.c.bf16 %v2275_v32, %v2275_v32 }
 0x169   :  { %v623_v34 = vpop.f32.mrf.mxu0  ;;  %v924_v35 = vpop.f32.mrf.mxu1 }
 0x16a   :  { %1784 = vst [vmem:[#allocation7 + $0x110] sm:$0xf] %v2114_v33  ;;  %v2121_v36 = vpack.c.bf16 %v623_v34, %v621_v31  ;;  %v2110_v37 = vpack.c.bf16 %v924_v35, %v924_v35 }
 0x16b   :  { %v625_v38 = vpop.f32.mrf.mxu0  ;;  %v2276_v39 = vpop.f32.mrf.mxu1 }
 0x16c   :  { %1791 = vst [vmem:[#allocation7 + $0x138] sm:$0xff] %v2121_v36  ;;  %1780 = vst [vmem:[#allocation7 + $0xf8] sm:$0xf] %v2110_v37  ;;  %v2116_v40 = vpack.c.bf16 %v2276_v39, %v2276_v39 }
 0x16d   :  { %v627_v41 = vpop.f32.mrf.mxu0  ;;  %v927_v42 = vpop.f32.mrf.mxu1 }
 0x16e   :  { %1786 = vst [vmem:[#allocation7 + $0x11c] sm:$0xf] %v2116_v40  ;;  %v2123_v43 = vpack.c.bf16 %v627_v41, %v625_v38  ;;  %v2112_v44 = vpack.c.bf16 %v927_v42, %v927_v42 }
 0x16f   :  { %v631_v45 = vpop.f32.mrf.mxu0  ;;  %v2279_v46 = vpop.f32.mrf.mxu1 }
 0x170   :  { %1793 = vst [vmem:[#allocation7 + $0x144] sm:$0xff] %v2123_v43  ;;  %1782 = vst [vmem:[#allocation7 + $0x104] sm:$0xf] %v2112_v44  ;;  %v2122_v47 = vpack.c.bf16 %v2279_v46, %v2279_v46 }
 0x171   :  { %v633_v48 = vpop.f32.mrf.mxu0  ;;  %v940_v49 = vpop.f32.mrf.mxu1 }
 0x172   :  { %1792 = vst [vmem:[#allocation7 + $0x140] sm:$0xf] %v2122_v47  ;;  %v2125_v50 = vpack.c.bf16 %v633_v48, %v631_v45  ;;  %v2118_v51 = vpack.c.bf16 %v940_v49, %v940_v49 }
 0x173   :  { %v635_v52 = vpop.f32.mrf.mxu0  ;;  %v2280_v53 = vpop.f32.mrf.mxu1 }
 0x174   :  { %1795 = vst [vmem:[#allocation7 + $0x150] sm:$0xff] %v2125_v50  ;;  %1788 = vst [vmem:[#allocation7 + $0x128] sm:$0xf] %v2118_v51  ;;  %v2124_v54 = vpack.c.bf16 %v2280_v53, %v2280_v53 }
 0x175   :  { %v637_v55 = vpop.f32.mrf.mxu0  ;;  %v943_v56 = vpop.f32.mrf.mxu1 }
 0x176   :  { %1794 = vst [vmem:[#allocation7 + $0x14c] sm:$0xf] %v2124_v54  ;;  %v2127_v57 = vpack.c.bf16 %v637_v55, %v635_v52  ;;  %v2120_v58 = vpack.c.bf16 %v943_v56, %v943_v56 }
 0x177   :  { %v641_v59 = vpop.f32.mrf.mxu0  ;;  %v2283_v60 = vpop.f32.mrf.mxu1 }
 0x178   :  { %1797 = vst [vmem:[#allocation7 + $0x15c] sm:$0xff] %v2127_v57  ;;  %1790 = vst [vmem:[#allocation7 + $0x134] sm:$0xf] %v2120_v58  ;;  %v2130_v61 = vpack.c.bf16 %v2283_v60, %v2283_v60 }
 0x179   :  { %v643_v62 = vpop.f32.mrf.mxu0  ;;  %v956_v63 = vpop.f32.mrf.mxu1 }
 0x17a   :  { %1800 = vst [vmem:[#allocation7 + $0x170] sm:$0xf] %v2130_v61  ;;  %v2129_v1 = vpack.c.bf16 %v643_v62, %v641_v59  ;;  %v2126_v2 = vpack.c.bf16 %v956_v63, %v956_v63 }
 0x17b   :  { %v645_v3 = vpop.f32.mrf.mxu0  ;;  %v2284_v4 = vpop.f32.mrf.mxu1 }
 0x17c   :  { %1799 = vst [vmem:[#allocation7 + $0x168] sm:$0xff] %v2129_v1  ;;  %1796 = vst [vmem:[#allocation7 + $0x158] sm:$0xf] %v2126_v2  ;;  %v2132_v5 = vpack.c.bf16 %v2284_v4, %v2284_v4 }
 0x17d   :  { %v647_v0 = vpop.f32.mrf.mxu0  ;;  %v959_v6 = vpop.f32.mrf.mxu1 }
 0x17e   :  { %1802 = vst [vmem:[#allocation7 + $0x17c] sm:$0xf] %v2132_v5  ;;  %v2131_v7 = vpack.c.bf16 %v647_v0, %v645_v3  ;;  %v2128_v8 = vpack.c.bf16 %v959_v6, %v959_v6 }
 0x17f   :  { %v651_v9 = vpop.f32.mrf.mxu0  ;;  %v2287_v10 = vpop.f32.mrf.mxu1 }
 0x180   :  { %1801 = vst [vmem:[#allocation7 + $0x174] sm:$0xff] %v2131_v7  ;;  %1798 = vst [vmem:[#allocation7 + $0x164] sm:$0xf] %v2128_v8  ;;  %v2138_v11 = vpack.c.bf16 %v2287_v10, %v2287_v10 }
 0x181   :  { %v653_v12 = vpop.f32.mrf.mxu0  ;;  %v972_v13 = vpop.f32.mrf.mxu1 }
 0x182   :  { %1808 = vst [vmem:[#allocation7 + $0x1a0] sm:$0xf] %v2138_v11  ;;  %v2133_v14 = vpack.c.bf16 %v653_v12, %v651_v9  ;;  %v2134_v15 = vpack.c.bf16 %v972_v13, %v972_v13 }
 0x183   :  { %v655_v16 = vpop.f32.mrf.mxu0  ;;  %v2288_v17 = vpop.f32.mrf.mxu1 }
 0x184   :  { %1803 = vst [vmem:[#allocation7 + $0x180] sm:$0xff] %v2133_v14  ;;  %1804 = vst [vmem:[#allocation7 + $0x188] sm:$0xf] %v2134_v15  ;;  %v2140_v18 = vpack.c.bf16 %v2288_v17, %v2288_v17 }
 0x185   :  { %v657_v19 = vpop.f32.mrf.mxu0  ;;  %v975_v20 = vpop.f32.mrf.mxu1 }
 0x186   :  { %1810 = vst [vmem:[#allocation7 + $0x1ac] sm:$0xf] %v2140_v18  ;;  %v2135_v21 = vpack.c.bf16 %v657_v19, %v655_v16  ;;  %v2136_v22 = vpack.c.bf16 %v975_v20, %v975_v20 }
 0x187   :  { %v661_v23 = vpop.f32.mrf.mxu0  ;;  %v2291_v24 = vpop.f32.mrf.mxu1 }
 0x188   :  { %1805 = vst [vmem:[#allocation7 + $0x18c] sm:$0xff] %v2135_v21  ;;  %1806 = vst [vmem:[#allocation7 + $0x194] sm:$0xf] %v2136_v22  ;;  %v2146_v25 = vpack.c.bf16 %v2291_v24, %v2291_v24 }
 0x189   :  { %v663_v26 = vpop.f32.mrf.mxu0  ;;  %v988_v27 = vpop.f32.mrf.mxu1 }
 0x18a   :  { %1816 = vst [vmem:[#allocation7 + $0x1d0] sm:$0xf] %v2146_v25  ;;  %v2137_v28 = vpack.c.bf16 %v663_v26, %v661_v23  ;;  %v2142_v29 = vpack.c.bf16 %v988_v27, %v988_v27 }
 0x18b   :  { %v665_v30 = vpop.f32.mrf.mxu0  ;;  %v2292_v31 = vpop.f32.mrf.mxu1 }
 0x18c   :  { %1807 = vst [vmem:[#allocation7 + $0x198] sm:$0xff] %v2137_v28  ;;  %1812 = vst [vmem:[#allocation7 + $0x1b8] sm:$0xf] %v2142_v29  ;;  %v2148_v32 = vpack.c.bf16 %v2292_v31, %v2292_v31 }
 0x18d   :  { %v667_v33 = vpop.f32.mrf.mxu0  ;;  %v991_v34 = vpop.f32.mrf.mxu1 }
 0x18e   :  { %1818 = vst [vmem:[#allocation7 + $0x1dc] sm:$0xf] %v2148_v32  ;;  %v2139_v35 = vpack.c.bf16 %v667_v33, %v665_v30  ;;  %v2144_v36 = vpack.c.bf16 %v991_v34, %v991_v34 }
 0x18f   :  { %v671_v37 = vpop.f32.mrf.mxu0  ;;  %v2295_v38 = vpop.f32.mrf.mxu1 }
 0x190   :  { %1809 = vst [vmem:[#allocation7 + $0x1a4] sm:$0xff] %v2139_v35  ;;  %1814 = vst [vmem:[#allocation7 + $0x1c4] sm:$0xf] %v2144_v36  ;;  %v2154_v39 = vpack.c.bf16 %v2295_v38, %v2295_v38 }
 0x191   :  { %v673_v40 = vpop.f32.mrf.mxu0  ;;  %v1004_v41 = vpop.f32.mrf.mxu1 }
 0x192   :  { %1824 = vst [vmem:[#allocation7 + $0x200] sm:$0xf] %v2154_v39  ;;  %v2141_v42 = vpack.c.bf16 %v673_v40, %v671_v37  ;;  %v2150_v43 = vpack.c.bf16 %v1004_v41, %v1004_v41 }
 0x193   :  { %v675_v44 = vpop.f32.mrf.mxu0  ;;  %v2296_v45 = vpop.f32.mrf.mxu1 }
 0x194   :  { %1811 = vst [vmem:[#allocation7 + $0x1b0] sm:$0xff] %v2141_v42  ;;  %1820 = vst [vmem:[#allocation7 + $0x1e8] sm:$0xf] %v2150_v43  ;;  %v2156_v46 = vpack.c.bf16 %v2296_v45, %v2296_v45 }
 0x195   :  { %v677_v47 = vpop.f32.mrf.mxu0  ;;  %v1007_v48 = vpop.f32.mrf.mxu1 }
 0x196   :  { %1826 = vst [vmem:[#allocation7 + $0x20c] sm:$0xf] %v2156_v46  ;;  %v2143_v49 = vpack.c.bf16 %v677_v47, %v675_v44  ;;  %v2152_v50 = vpack.c.bf16 %v1007_v48, %v1007_v48 }
 0x197   :  { %v681_v51 = vpop.f32.mrf.mxu0  ;;  %v2299_v52 = vpop.f32.mrf.mxu1 }
 0x198   :  { %1813 = vst [vmem:[#allocation7 + $0x1bc] sm:$0xff] %v2143_v49  ;;  %1822 = vst [vmem:[#allocation7 + $0x1f4] sm:$0xf] %v2152_v50  ;;  %v2162_v53 = vpack.c.bf16 %v2299_v52, %v2299_v52 }
 0x199   :  { %v683_v54 = vpop.f32.mrf.mxu0  ;;  %v1020_v55 = vpop.f32.mrf.mxu1 }
 0x19a   :  { %1832 = vst [vmem:[#allocation7 + $0x230] sm:$0xf] %v2162_v53  ;;  %v2145_v56 = vpack.c.bf16 %v683_v54, %v681_v51  ;;  %v2158_v57 = vpack.c.bf16 %v1020_v55, %v1020_v55 }
 0x19b   :  { %v685_v58 = vpop.f32.mrf.mxu0  ;;  %v2300_v59 = vpop.f32.mrf.mxu1 }
 0x19c   :  { %1815 = vst [vmem:[#allocation7 + $0x1c8] sm:$0xff] %v2145_v56  ;;  %1828 = vst [vmem:[#allocation7 + $0x218] sm:$0xf] %v2158_v57  ;;  %v2164_v60 = vpack.c.bf16 %v2300_v59, %v2300_v59 }
 0x19d   :  { %v687_v61 = vpop.f32.mrf.mxu0  ;;  %v1023_v62 = vpop.f32.mrf.mxu1 }
 0x19e   :  { %1834 = vst [vmem:[#allocation7 + $0x23c] sm:$0xf] %v2164_v60  ;;  %v2147_v63 = vpack.c.bf16 %v687_v61, %v685_v58  ;;  %v2160_v1 = vpack.c.bf16 %v1023_v62, %v1023_v62 }
 0x19f   :  { %v691_v2 = vpop.f32.mrf.mxu0  ;;  %v2303_v3 = vpop.f32.mrf.mxu1 }
 0x1a0   :  { %1817 = vst [vmem:[#allocation7 + $0x1d4] sm:$0xff] %v2147_v63  ;;  %1830 = vst [vmem:[#allocation7 + $0x224] sm:$0xf] %v2160_v1  ;;  %v2170_v4 = vpack.c.bf16 %v2303_v3, %v2303_v3 }
 0x1a1   :  { %v693_v5 = vpop.f32.mrf.mxu0  ;;  %v1036_v0 = vpop.f32.mrf.mxu1 }
 0x1a2   :  { %1840 = vst [vmem:[#allocation7 + $0x260] sm:$0xf] %v2170_v4  ;;  %v2149_v6 = vpack.c.bf16 %v693_v5, %v691_v2  ;;  %v2166_v7 = vpack.c.bf16 %v1036_v0, %v1036_v0 }
 0x1a3   :  { %v695_v8 = vpop.f32.mrf.mxu0  ;;  %v2304_v9 = vpop.f32.mrf.mxu1 }
 0x1a4   :  { %1819 = vst [vmem:[#allocation7 + $0x1e0] sm:$0xff] %v2149_v6  ;;  %1836 = vst [vmem:[#allocation7 + $0x248] sm:$0xf] %v2166_v7  ;;  %v2172_v10 = vpack.c.bf16 %v2304_v9, %v2304_v9 }
 0x1a5   :  { %v697_v11 = vpop.f32.mrf.mxu0  ;;  %v1039_v12 = vpop.f32.mrf.mxu1 }
 0x1a6   :  { %1842 = vst [vmem:[#allocation7 + $0x26c] sm:$0xf] %v2172_v10  ;;  %v2151_v13 = vpack.c.bf16 %v697_v11, %v695_v8  ;;  %v2168_v14 = vpack.c.bf16 %v1039_v12, %v1039_v12 }
 0x1a7   :  { %v701_v15 = vpop.f32.mrf.mxu0  ;;  %v2307_v16 = vpop.f32.mrf.mxu1 }
 0x1a8   :  { %1821 = vst [vmem:[#allocation7 + $0x1ec] sm:$0xff] %v2151_v13  ;;  %1838 = vst [vmem:[#allocation7 + $0x254] sm:$0xf] %v2168_v14  ;;  %v2178_v17 = vpack.c.bf16 %v2307_v16, %v2307_v16 }
 0x1a9   :  { %v703_v18 = vpop.f32.mrf.mxu0  ;;  %v1052_v19 = vpop.f32.mrf.mxu1 }
 0x1aa   :  { %1848 = vst [vmem:[#allocation7 + $0x290] sm:$0xf] %v2178_v17  ;;  %v2153_v20 = vpack.c.bf16 %v703_v18, %v701_v15  ;;  %v2174_v21 = vpack.c.bf16 %v1052_v19, %v1052_v19 }
 0x1ab   :  { %v705_v22 = vpop.f32.mrf.mxu0  ;;  %v2308_v23 = vpop.f32.mrf.mxu1 }
 0x1ac   :  { %1823 = vst [vmem:[#allocation7 + $0x1f8] sm:$0xff] %v2153_v20  ;;  %1844 = vst [vmem:[#allocation7 + $0x278] sm:$0xf] %v2174_v21  ;;  %v2180_v24 = vpack.c.bf16 %v2308_v23, %v2308_v23 }
 0x1ad   :  { %v707_v25 = vpop.f32.mrf.mxu0  ;;  %v1055_v26 = vpop.f32.mrf.mxu1 }
 0x1ae   :  { %1850 = vst [vmem:[#allocation7 + $0x29c] sm:$0xf] %v2180_v24  ;;  %v2155_v27 = vpack.c.bf16 %v707_v25, %v705_v22  ;;  %v2176_v28 = vpack.c.bf16 %v1055_v26, %v1055_v26 }
 0x1af   :  { %v711_v29 = vpop.f32.mrf.mxu0  ;;  %v2311_v30 = vpop.f32.mrf.mxu1 }
 0x1b0   :  { %1825 = vst [vmem:[#allocation7 + $0x204] sm:$0xff] %v2155_v27  ;;  %1846 = vst [vmem:[#allocation7 + $0x284] sm:$0xf] %v2176_v28  ;;  %v2186_v31 = vpack.c.bf16 %v2311_v30, %v2311_v30 }
 0x1b1   :  { %v713_v32 = vpop.f32.mrf.mxu0  ;;  %v1068_v33 = vpop.f32.mrf.mxu1 }
 0x1b2   :  { %1856 = vst [vmem:[#allocation7 + $0x2c0] sm:$0xf] %v2186_v31  ;;  %v2157_v34 = vpack.c.bf16 %v713_v32, %v711_v29  ;;  %v2182_v35 = vpack.c.bf16 %v1068_v33, %v1068_v33 }
 0x1b3   :  { %v715_v36 = vpop.f32.mrf.mxu0  ;;  %v2312_v37 = vpop.f32.mrf.mxu1 }
 0x1b4   :  { %1827 = vst [vmem:[#allocation7 + $0x210] sm:$0xff] %v2157_v34  ;;  %1852 = vst [vmem:[#allocation7 + $0x2a8] sm:$0xf] %v2182_v35  ;;  %v2188_v38 = vpack.c.bf16 %v2312_v37, %v2312_v37 }
 0x1b5   :  { %v717_v39 = vpop.f32.mrf.mxu0  ;;  %v1071_v40 = vpop.f32.mrf.mxu1 }
 0x1b6   :  { %1858 = vst [vmem:[#allocation7 + $0x2cc] sm:$0xf] %v2188_v38  ;;  %v2159_v41 = vpack.c.bf16 %v717_v39, %v715_v36  ;;  %v2184_v42 = vpack.c.bf16 %v1071_v40, %v1071_v40 }
 0x1b7   :  { %v721_v43 = vpop.f32.mrf.mxu0  ;;  %v2315_v44 = vpop.f32.mrf.mxu1 }
 0x1b8   :  { %1829 = vst [vmem:[#allocation7 + $0x21c] sm:$0xff] %v2159_v41  ;;  %1854 = vst [vmem:[#allocation7 + $0x2b4] sm:$0xf] %v2184_v42  ;;  %v2194_v45 = vpack.c.bf16 %v2315_v44, %v2315_v44 }
 0x1b9   :  { %v723_v46 = vpop.f32.mrf.mxu0  ;;  %v1084_v47 = vpop.f32.mrf.mxu1 }
 0x1ba   :  { %1864 = vst [vmem:[#allocation7 + $0x2f0] sm:$0xf] %v2194_v45  ;;  %v2161_v48 = vpack.c.bf16 %v723_v46, %v721_v43  ;;  %v2190_v49 = vpack.c.bf16 %v1084_v47, %v1084_v47 }
 0x1bb   :  { %v725_v50 = vpop.f32.mrf.mxu0  ;;  %v2316_v51 = vpop.f32.mrf.mxu1 }
 0x1bc   :  { %1831 = vst [vmem:[#allocation7 + $0x228] sm:$0xff] %v2161_v48  ;;  %1860 = vst [vmem:[#allocation7 + $0x2d8] sm:$0xf] %v2190_v49  ;;  %v2196_v52 = vpack.c.bf16 %v2316_v51, %v2316_v51 }
 0x1bd   :  { %v727_v53 = vpop.f32.mrf.mxu0  ;;  %v1087_v54 = vpop.f32.mrf.mxu1 }
 0x1be   :  { %1866 = vst [vmem:[#allocation7 + $0x2fc] sm:$0xf] %v2196_v52  ;;  %v2163_v55 = vpack.c.bf16 %v727_v53, %v725_v50  ;;  %v2192_v56 = vpack.c.bf16 %v1087_v54, %v1087_v54 }
 0x1c0   :  { %1833 = vst [vmem:[#allocation7 + $0x234] sm:$0xff] %v2163_v55  ;;  %1862 = vst [vmem:[#allocation7 + $0x2e4] sm:$0xf] %v2192_v56 }
 0x1c1   :  { %2456 = shalt.err (!%p2453_p0)
}
 0x1c2   :  { %1878 = dma.vmem_to_hbm [thread:$0]  %s1873_s1, 12288, %s2579_s2, [#allocation4], %s2475_s19, %s2475_s19, %s2476_s20  }
 0x1c3   :  { %2469 = dma.done.wait [#allocation4], 12288  }
 0x1c4   :  { %2470 = vsyncadd [#allocation4], 4294955008 }
 0x1c5   :  { %1882 = vsyncpa [#allocation3], 1 }
 0x1c6   :  { %1883 = vsyncpa [#allocation6], 1 }
 0x1c7   :  { %1884 = vsyncpa [#allocation4], 1 }

</bundles_post_ra>
